<compile_context>
chip_gen: v5e
topology: v5e:2x2
jax: 0.10.0
libtpu: 0.0.40
codegen_flags: <defaults>
</compile_context>

<pallas_src>
import functools

import jax
import jax.numpy as jnp
from jax.experimental import pallas as pl
from jax.experimental.pallas import tpu as pltpu

ALPHA = 1.0
GAMMA = 2.0


def _round_up(x, m):
    return ((x + m - 1) // m) * m


def _choose_tiles(n, c, in_itemsize,
                  vmem_budget_bytes=16 << 20,   # ~half of v7x's 32 MiB scoped default
                  target_tile_n=512,
                  max_tile_n=2048):
    """Pick (tile_n, tile_c).

    VMEM per grid step ~= tile_n * (tile_c * (2*itemsize + 4) + 5*128*4):
    two double-buffered streamed logits copies + one f32 working copy, plus
    the lane-padded (tile_n, 1) scratch columns (3 x f32) and double-buffered
    target buffers (2 x i32).  The budget is kept conservative so the same
    tiling is safe on v5e / v6e / v7x.
    """
    n_pad = _round_up(max(n, 1), 8)
    per_elem = 2 * in_itemsize + 4
    per_row_fixed = 5 * 128 * 4

    def fits(tn, tc):
        return tn * (tc * per_elem + per_row_fixed) <= vmem_budget_bytes

    tile_n = _round_up(min(max(target_tile_n, 8), max_tile_n, n_pad), 8)

    tile_c = c
    if not fits(tile_n, tile_c):
        # Tile the class dim (online LSE) in lane-dense multiples of 128.
        tile_c = (vmem_budget_bytes // tile_n - per_row_fixed) // per_elem
        tile_c = max(128, (tile_c // 128) * 128)
        if tile_c >= c:
            tile_c = c
    while tile_n > 8 and not fits(tile_n, tile_c):
        tile_n = max(8, (tile_n // 2) // 8 * 8)

    # v7x has 2 TensorCores: keep >= 2 row blocks when the batch allows it.
    if n_pad >= 16 and tile_n >= n_pad:
        tile_n = _round_up(n_pad // 2, 8)
    return tile_n, tile_c


def _focal_ce_kernel(logits_ref, targets_ref, out_ref, m_sc, s_sc, t_sc, *,
                     n_rows, n_cols, tile_n, tile_c):
    """Online-LSE cross entropy.

    Grid = (row tiles ["parallel"], class tiles ["arbitrary", innermost]).
    Scratch carries the running row-max / row-sum / target-logit across the
    class tiles; the last class tile finalizes and writes one lane-dense
    per-block partial CE sum.
    """
    i = pl.program_id(0)          # row-tile index
    j = pl.program_id(1)          # class-tile index

    @pl.when(j == 0)
    def _init():
        m_sc[...] = jnp.full(m_sc.shape, -jnp.inf, jnp.float32)
        s_sc[...] = jnp.zeros(s_sc.shape, jnp.float32)
        t_sc[...] = jnp.zeros(t_sc.shape, jnp.float32)

    # Stream logits in their input dtype (bf16 OK); f32 cast only on the tile.
    logits = logits_ref[...].astype(jnp.float32)          # (tile_n, tile_c)
    targets = targets_ref[...]                             # (tile_n, 1) int32

    col_ids = jax.lax.broadcasted_iota(jnp.int32, (tile_n, tile_c), 1) + j * tile_c
    if n_cols % tile_c != 0:
        # Mask the padded class tail of the last block out of max / exp.
        logits = jnp.where(col_ids < n_cols, logits, -jnp.inf)

    # Target gather straight from the (masked) raw logits: single traversal,
    # no re-read of a shifted temporary.  Padded columns never match a target.
    t_sc[...] += jnp.sum(jnp.where(col_ids == targets, logits, 0.0),
                         axis=-1, keepdims=True)

    # Online log-sum-exp update (degenerates to a plain LSE when grid_c == 1).
    blk_max = jnp.max(logits, axis=-1, keepdims=True)      # (tile_n, 1)
    m_new = jnp.maximum(m_sc[...], blk_max)
    s_sc[...] = (s_sc[...] * jnp.exp(m_sc[...] - m_new)
                 + jnp.sum(jnp.exp(logits - m_new), axis=-1, keepdims=True))
    m_sc[...] = m_new

    @pl.when(j == pl.num_programs(1) - 1)
    def _finalize():
        # per-row CE = logsumexp(logits) - logits[target]
        per_row = jnp.log(s_sc[...]) + m_sc[...] - t_sc[...]        # (tile_n, 1)
        if n_rows % tile_n != 0:
            # Mask padded tail rows BEFORE the sum so garbage cannot leak.
            row_ids = jax.lax.broadcasted_iota(jnp.int32, (tile_n, 1), 0) + i * tile_n
            per_row = jnp.where(row_ids < n_rows, per_row, 0.0)
        partial = jnp.sum(per_row, axis=0, keepdims=True)            # (1, 1)
        # One lane-dense full-vreg slab per row block (unmasked stores).
        out_ref[...] = jnp.broadcast_to(partial, (8, 128)).reshape(1, 8, 128)


def focal_loss(logits, targets, *, alpha=ALPHA, gamma=GAMMA,
               tile_n=None, tile_c=None, vmem_limit_bytes=48 << 20):
    """logits: (N, C) float32/bfloat16, targets: (N,) int -> scalar float32."""
    n, c = logits.shape
    itemsize = jnp.dtype(logits.dtype).itemsize
    auto_tn, auto_tc = _choose_tiles(n, c, itemsize)
    tile_n = auto_tn if tile_n is None else tile_n
    tile_c = auto_tc if tile_c is None else tile_c

    grid_n = pl.cdiv(n, tile_n)
    grid_c = pl.cdiv(c, tile_c)

    targets2d = targets.astype(jnp.int32).reshape(n, 1)
    kernel = functools.partial(_focal_ce_kernel, n_rows=n, n_cols=c,
                               tile_n=tile_n, tile_c=tile_c)

    partials = pl.pallas_call(
        kernel,
        out_shape=jax.ShapeDtypeStruct((grid_n, 8, 128), jnp.float32),
        grid_spec=pltpu.PrefetchScalarGridSpec(
            num_scalar_prefetch=0,
            grid=(grid_n, grid_c),
            in_specs=[
                pl.BlockSpec((tile_n, tile_c), lambda i, j: (i, j)),
                pl.BlockSpec((tile_n, 1), lambda i, j: (i, 0)),
            ],
            out_specs=pl.BlockSpec((1, 8, 128), lambda i, j: (i, 0, 0)),
            scratch_shapes=[
                pltpu.VMEM((tile_n, 1), jnp.float32),   # running row max
                pltpu.VMEM((tile_n, 1), jnp.float32),   # running exp-sum
                pltpu.VMEM((tile_n, 1), jnp.float32),   # target logit
            ],
        ),
        compiler_params=pltpu.CompilerParams(
            dimension_semantics=("parallel", "arbitrary"),
            vmem_limit_bytes=vmem_limit_bytes,
        ),
    )(logits, targets2d)

    # Tiny finalize in the wrapper: batch-mean CE, then focal modulation
    # (applied to the *mean* CE, matching the PyTorch module).
    ce = jnp.sum(partials[:, 0, 0]) / jnp.float32(n)
    pt = jnp.exp(-ce)
    one_minus_pt = 1.0 - pt
    if gamma == 2:                       # avoid float pow lowering
        mod = one_minus_pt * one_minus_pt
    else:
        mod = one_minus_pt ** gamma
    return jnp.float32(alpha) * mod * ce


def focal_loss_ref(logits, targets, *, alpha=ALPHA, gamma=GAMMA):
    """Pure-JAX reference mirroring torch CrossEntropyLoss + focal formula."""
    logp = jax.nn.log_softmax(logits.astype(jnp.float32), axis=-1)
    ce = -jnp.mean(jnp.take_along_axis(logp, targets[:, None], axis=-1))
    pt = jnp.exp(-ce)
    return alpha * (1.0 - pt) ** gamma * ce


if __name__ == "__main__":
    key = jax.random.PRNGKey(0)
    k1, k2, k3, k4 = jax.random.split(key, 4)

    # Test 1: small classification shape; N not a multiple of the row tile so
    # the tail-row mask path is exercised; C=128 keeps lanes dense; auto tile
    # selection yields >= 2 row blocks (v7x two-TC path).
    N, C = 12, 128
    logits = jax.random.normal(k1, (N, C), dtype=jnp.float32)
    targets = jax.random.randint(k2, (N,), 0, C, dtype=jnp.int32)
    out = jax.block_until_ready(focal_loss(logits, targets))
    ref = focal_loss_ref(logits, targets)
    assert jnp.allclose(out, ref, atol=1e-5, rtol=1e-5), (out, ref)

    # Test 2: exercise the class-tiled online-LSE path (grid_c > 1) with a
    # ragged class count (column-mask branch) and a ragged batch.
    N2, C2 = 20, 200
    logits2 = jax.random.normal(k3, (N2, C2), dtype=jnp.float32)
    targets2 = jax.random.randint(k4, (N2,), 0, C2, dtype=jnp.int32)
    out2 = jax.block_until_ready(focal_loss(logits2, targets2, tile_n=8, tile_c=128))
    ref2 = focal_loss_ref(logits2, targets2)
    assert jnp.allclose(out2, ref2, atol=1e-5, rtol=1e-5), (out2, ref2)

    print("KERNEL_OK")
</pallas_src>

<mosaic_0001>
module attributes {stable_mosaic.version = 11 : i64} {
  func.func @_focal_ce_kernel(%arg0: i32, %arg1: i32, %arg2: memref<8x128xf32, #tpu.memory_space<vmem>>, %arg3: memref<8x1xi32, #tpu.memory_space<vmem>>, %arg4: memref<1x8x128xf32, #tpu.memory_space<vmem>>, %arg5: memref<8x1xf32, #tpu.memory_space<vmem>>, %arg6: memref<8x1xf32, #tpu.memory_space<vmem>>, %arg7: memref<8x1xf32, #tpu.memory_space<vmem>>) attributes {dimension_semantics = [#tpu.dimension_semantics<parallel>, #tpu.dimension_semantics<arbitrary>], iteration_bounds = array<i64: 2, 1>, scalar_prefetch = 0 : i64, scratch_operands = 3 : i64, tpu.core_type = #tpu.core_type<tc>, window_params = [{transform_indices = @transform_0, window_bounds = array<i64: 8, 128>}, {transform_indices = @transform_1, window_bounds = array<i64: 8, 1>}, {transform_indices = @transform_2, window_bounds = array<i64: 1, 8, 128>}]} {
    %c0_i32 = arith.constant 0 : i32
    %0 = arith.cmpi eq, %arg1, %c0_i32 : i32
    %1 = arith.extui %0 : i1 to i32
    %c0_i32_0 = arith.constant 0 : i32
    %2 = arith.cmpi ne, %1, %c0_i32_0 : i32
    scf.if %2 {
      %cst_23 = arith.constant 0xFF800000 : f32
      %38 = vector.broadcast %cst_23 : f32 to vector<8x1xf32>
      %c0_24 = arith.constant 0 : index
      %c0_25 = arith.constant 0 : index
      %39 = vector.load %arg5[%c0_24, %c0_25] : memref<8x1xf32, #tpu.memory_space<vmem>>, vector<8x1xf32>
      tpu.vector_store %arg5[%c0_24, %c0_25], %38 {strides = array<i32>} : memref<8x1xf32, #tpu.memory_space<vmem>>, vector<8x1xf32>,
      %cst_26 = arith.constant 0.000000e+00 : f32
      %40 = vector.broadcast %cst_26 : f32 to vector<8x1xf32>
      %c0_27 = arith.constant 0 : index
      %c0_28 = arith.constant 0 : index
      %41 = vector.load %arg6[%c0_27, %c0_28] : memref<8x1xf32, #tpu.memory_space<vmem>>, vector<8x1xf32>
      tpu.vector_store %arg6[%c0_27, %c0_28], %40 {strides = array<i32>} : memref<8x1xf32, #tpu.memory_space<vmem>>, vector<8x1xf32>,
      %cst_29 = arith.constant 0.000000e+00 : f32
      %42 = vector.broadcast %cst_29 : f32 to vector<8x1xf32>
      %c0_30 = arith.constant 0 : index
      %c0_31 = arith.constant 0 : index
      %43 = vector.load %arg7[%c0_30, %c0_31] : memref<8x1xf32, #tpu.memory_space<vmem>>, vector<8x1xf32>
      tpu.vector_store %arg7[%c0_30, %c0_31], %42 {strides = array<i32>} : memref<8x1xf32, #tpu.memory_space<vmem>>, vector<8x1xf32>,
    } else {
    }
    %c0 = arith.constant 0 : index
    %c0_1 = arith.constant 0 : index
    %3 = vector.load %arg2[%c0, %c0_1] : memref<8x128xf32, #tpu.memory_space<vmem>>, vector<8x128xf32>
    %c0_2 = arith.constant 0 : index
    %c0_3 = arith.constant 0 : index
    %4 = vector.load %arg3[%c0_2, %c0_3] : memref<8x1xi32, #tpu.memory_space<vmem>>, vector<8x1xi32>
    %5 = tpu.iota {dimensions = array<i32: 1>} : vector<8x128xi32>
    %c128_i32 = arith.constant 128 : i32
    %6 = arith.muli %arg1, %c128_i32 : i32
    %7 = vector.broadcast %6 : i32 to vector<8x128xi32>
    %8 = arith.addi %5, %7 : vector<8x128xi32>
    %c0_4 = arith.constant 0 : index
    %c0_5 = arith.constant 0 : index
    %9 = vector.load %arg7[%c0_4, %c0_5] : memref<8x1xf32, #tpu.memory_space<vmem>>, vector<8x1xf32>
    %10 = vector.broadcast %4 : vector<8x1xi32> to vector<8x128xi32>
    %11 = arith.cmpi eq, %8, %10 : vector<8x128xi32>
    %cst = arith.constant 0.000000e+00 : f32
    %12 = vector.broadcast %cst : f32 to vector<8x128xf32>
    %13 = arith.select %11, %3, %12 : vector<8x128xi1>, vector<8x128xf32>
    %cst_6 = arith.constant dense<0.000000e+00> : vector<8xf32>
    %14 = vector.multi_reduction <add>, %13, %cst_6 [1] : vector<8x128xf32> to vector<8xf32>
    %15 = vector.shape_cast %14 : vector<8xf32> to vector<8x1xf32>
    %16 = arith.addf %9, %15 : vector<8x1xf32>
    %c0_7 = arith.constant 0 : index
    %c0_8 = arith.constant 0 : index
    %17 = vector.load %arg7[%c0_7, %c0_8] : memref<8x1xf32, #tpu.memory_space<vmem>>, vector<8x1xf32>
    tpu.vector_store %arg7[%c0_7, %c0_8], %16 {strides = array<i32>} : memref<8x1xf32, #tpu.memory_space<vmem>>, vector<8x1xf32>,
    %cst_9 = arith.constant dense<0xFF800000> : vector<8xf32>
    %18 = vector.multi_reduction <maximumf>, %3, %cst_9 [1] : vector<8x128xf32> to vector<8xf32>
    %19 = vector.shape_cast %18 : vector<8xf32> to vector<8x1xf32>
    %c0_10 = arith.constant 0 : index
    %c0_11 = arith.constant 0 : index
    %20 = vector.load %arg5[%c0_10, %c0_11] : memref<8x1xf32, #tpu.memory_space<vmem>>, vector<8x1xf32>
    %21 = arith.maximumf %20, %19 : vector<8x1xf32>
    %c0_12 = arith.constant 0 : index
    %c0_13 = arith.constant 0 : index
    %22 = vector.load %arg6[%c0_12, %c0_13] : memref<8x1xf32, #tpu.memory_space<vmem>>, vector<8x1xf32>
    %c0_14 = arith.constant 0 : index
    %c0_15 = arith.constant 0 : index
    %23 = vector.load %arg5[%c0_14, %c0_15] : memref<8x1xf32, #tpu.memory_space<vmem>>, vector<8x1xf32>
    %24 = arith.subf %23, %21 : vector<8x1xf32>
    %25 = math.exp %24 : vector<8x1xf32>
    %26 = arith.mulf %22, %25 : vector<8x1xf32>
    %27 = vector.broadcast %21 : vector<8x1xf32> to vector<8x128xf32>
    %28 = arith.subf %3, %27 : vector<8x128xf32>
    %29 = math.exp %28 : vector<8x128xf32>
    %cst_16 = arith.constant dense<0.000000e+00> : vector<8xf32>
    %30 = vector.multi_reduction <add>, %29, %cst_16 [1] : vector<8x128xf32> to vector<8xf32>
    %31 = vector.shape_cast %30 : vector<8xf32> to vector<8x1xf32>
    %32 = arith.addf %26, %31 : vector<8x1xf32>
    %c0_17 = arith.constant 0 : index
    %c0_18 = arith.constant 0 : index
    %33 = vector.load %arg6[%c0_17, %c0_18] : memref<8x1xf32, #tpu.memory_space<vmem>>, vector<8x1xf32>
    tpu.vector_store %arg6[%c0_17, %c0_18], %32 {strides = array<i32>} : memref<8x1xf32, #tpu.memory_space<vmem>>, vector<8x1xf32>,
    %c0_19 = arith.constant 0 : index
    %c0_20 = arith.constant 0 : index
    %34 = vector.load %arg5[%c0_19, %c0_20] : memref<8x1xf32, #tpu.memory_space<vmem>>, vector<8x1xf32>
    tpu.vector_store %arg5[%c0_19, %c0_20], %21 {strides = array<i32>} : memref<8x1xf32, #tpu.memory_space<vmem>>, vector<8x1xf32>,
    %c0_i32_21 = arith.constant 0 : i32
    %35 = arith.cmpi eq, %arg1, %c0_i32_21 : i32
    %36 = arith.extui %35 : i1 to i32
    %c0_i32_22 = arith.constant 0 : i32
    %37 = arith.cmpi ne, %36, %c0_i32_22 : i32
    scf.if %37 {
      %c0_23 = arith.constant 0 : index
      %c0_24 = arith.constant 0 : index
      %38 = vector.load %arg6[%c0_23, %c0_24] : memref<8x1xf32, #tpu.memory_space<vmem>>, vector<8x1xf32>
      %39 = math.log %38 : vector<8x1xf32>
      %c0_25 = arith.constant 0 : index
      %c0_26 = arith.constant 0 : index
      %40 = vector.load %arg5[%c0_25, %c0_26] : memref<8x1xf32, #tpu.memory_space<vmem>>, vector<8x1xf32>
      %41 = arith.addf %39, %40 : vector<8x1xf32>
      %c0_27 = arith.constant 0 : index
      %c0_28 = arith.constant 0 : index
      %42 = vector.load %arg7[%c0_27, %c0_28] : memref<8x1xf32, #tpu.memory_space<vmem>>, vector<8x1xf32>
      %43 = arith.subf %41, %42 : vector<8x1xf32>
      %44 = tpu.iota {dimensions = array<i32: 0>} : vector<8x1xi32>
      %c8_i32 = arith.constant 8 : i32
      %45 = arith.muli %arg0, %c8_i32 : i32
      %46 = vector.broadcast %45 : i32 to vector<8x1xi32>
      %47 = arith.addi %44, %46 : vector<8x1xi32>
      %c12_i32 = arith.constant 12 : i32
      %48 = vector.broadcast %c12_i32 : i32 to vector<8x1xi32>
      %49 = arith.cmpi slt, %47, %48 : vector<8x1xi32>
      %cst_29 = arith.constant 0.000000e+00 : f32
      %50 = vector.broadcast %cst_29 : f32 to vector<8x1xf32>
      %51 = arith.select %49, %43, %50 : vector<8x1xi1>, vector<8x1xf32>
      %cst_30 = arith.constant dense<0.000000e+00> : vector<1xf32>
      %52 = vector.multi_reduction <add>, %51, %cst_30 [0] : vector<8x1xf32> to vector<1xf32>
      %53 = vector.shape_cast %52 : vector<1xf32> to vector<1x1xf32>
      %54 = vector.shape_cast %53 : vector<1x1xf32> to vector<1x1xf32>
      %55 = vector.broadcast %54 : vector<1x1xf32> to vector<8x128xf32>
      %56 = vector.shape_cast %55 : vector<8x128xf32> to vector<1x8x128xf32>
      %c0_31 = arith.constant 0 : index
      %c0_32 = arith.constant 0 : index
      %c0_33 = arith.constant 0 : index
      %57 = vector.load %arg4[%c0_31, %c0_32, %c0_33] : memref<1x8x128xf32, #tpu.memory_space<vmem>>, vector<1x8x128xf32>
      tpu.vector_store %arg4[%c0_31, %c0_32, %c0_33], %56 {strides = array<i32>} : memref<1x8x128xf32, #tpu.memory_space<vmem>>, vector<1x8x128xf32>,
    } else {
    }
    return
  }
  func.func @transform_0(%arg0: i32, %arg1: i32) -> (i32, i32) {
    %c0_i32 = arith.constant 0 : i32
    return %arg0, %arg1 : i32, i32
  }
  func.func @transform_1(%arg0: i32, %arg1: i32) -> (i32, i32) {
    %c0_i32 = arith.constant 0 : i32
    %c0_i32_0 = arith.constant 0 : i32
    return %arg0, %c0_i32 : i32, i32
  }
  func.func @transform_2(%arg0: i32, %arg1: i32) -> (i32, i32, i32) {
    %c0_i32 = arith.constant 0 : i32
    %c0_i32_0 = arith.constant 0 : i32
    %c0_i32_1 = arith.constant 0 : i32
    return %arg0, %c0_i32, %c0_i32_0 : i32, i32, i32
  }
}

</mosaic_0001>

<bundles_post_ra>
// kernel: tpu_custom_call.1
= control target key start
LH: loop header
LB: loop body
LE: loop exit
PB: predicated region body
PF: predicated region fallthrough
CT: control target
= control target key end

     0   :  { %7 = vsyncpa [#allocation6], 0  ;;  %s640_s0 = inlined_call_operand.vmem [shape: f32[12,128], index: 0, kind: input, shape index: {}]   ;;  %s641_s1 = inlined_call_operand.vmem [shape: s32[12,1], index: 1, kind: input, shape index: {}]   ;;  %s642_s2 = inlined_call_operand.hbm [shape: f32[2,8,128], index: 2, kind: output, shape index: {}]  }
   0x1   :  { %9 = vsyncpa [#allocation6 + $0x1], 0  ;;  %s533_s9 = smov 0   ;;  %s535_s10 = smov 0  }
   0x2   :  { %s537_s11 = smov 0   ;;  %s539_s12 = smov 0  }
   0x3   :  { %s541_s13 = smov 0   ;;  %s543_s14 = smov 0  }
   0x4 LB: > { %s355_s15 = sadd.s32 4294967295, %s513_s14   ;;  %s356_s16 = sadd.s32 4294967294, %s513_s14   ;;  %s513_s14 = sphi %s543_s14, %s15_s14   ;;  %s509_s13 = sphi %s541_s13, %s649_s13   ;;  %s505_s12 = sphi %s539_s12, %s648_s12   ;;  %s501_s11 = sphi %s537_s11, %s647_s11   ;;  %s497_s10 = sphi %s535_s10, %s646_s10   ;;  %s493_s9 = sphi %s533_s9, %s645_s9  }
   0x5   : > { %s27_s17 = sadd.s32 1, %s509_s13  ;;  %s88_s18 = sadd.s32 1, %s501_s11 }
   0x6   : > { %p29_p0 = scmp.ge.s32.totalorder %s27_s17, 2  ;;  %p98_p1 = scmp.ne.s32.totalorder %s501_s11, %s497_s10 }
   0x7   : > { %p99_p2 = scmp.eq.s32.totalorder %s355_s15, 1  ;;  %p104_p3 = scmp.ne.s32.totalorder %s497_s10, %s493_s9 }
   0x8   : > { %s651_s17 = smov (%p29_p0, %s27_s17), 0  ;;  %p105_p5 = scmp.eq.s32.totalorder %s356_s16, 1 }
   0x9   : > { %p573_p4 = por %p99_p2, %p98_p1  ;;  %s85_s20 = ssub.s32 %s509_s13, %s651_s17 }
   0xa   : > { %p359_p6 = scmp.ge.s32.totalorder %s513_s14, 1  ;;  %p86_p7 = scmp.eq.s32.totalorder %s85_s20, 0 }
   0xb   : > { %p580_p8 = por %p105_p5, %p104_p3  ;;  %p140_p9 = scmp.lt.s32.totalorder %s513_s14, 3 }
   0xc   : > { %s586_s22 = scalar_select %p86_p7, %s501_s11, %s88_s18  }
   0xd   : > { %p141_p10 = pnand %p359_p6, %p140_p9 }
   0xe   : > { %p168_p11 = scmp.lt.s32.totalorder (!%p141_p10), %s505_s12, 1  ;;  %s363_s3 = sshll.u32 (!%p141_p10), %s505_s12, 3 }
   0xf   : > { %144 = sbr.rel (%p141_p10) target bundleno = 516 (0x204), region = 28  ;;  %s165_s4 = sand.u32 (!%p141_p10), 1, %s497_s10  }
  0x10   : > { %s360_s5 = sshll.u32 (!%p141_p10), %s165_s4, 3  ;;  %s268_s8 = scalar_lea.hbm (!%p141_p10), %s642_s2, %s363_s3 }
  0x11   : > { %s272_s16 = sshll.u32 (!%p141_p10), %s268_s8, 4  ;;  %s258_s18 = scalar_lea.sflag (!%p141_p10), [#allocation6], %s165_s4  ;;  %s273_s16 = int_to_ptr.hbm [resolvable:$true] %s272_s16 }
  0x12   : > { %s449_s20 = sshra.s32 (!%p141_p10), %s273_s16, 4  ;;  %s455_s26 = scalar_lea.hbm (!%p141_p10), %s642_s2, 16  ;;  %s450_s20 = int_to_ptr.hbm [resolvable:$true] %s449_s20 }
  0x13   : > { %p456_p1 = scmp.lt.s32.totalorder (!%p141_p10), %s450_s20, %s642_s2 }
  0x14   : > { %vm183_vm0 = vcmask 7168   ;;  %v515_v0 = vmov -inf   ;;  %s169_s23 = scalar_select %p168_p11, %s505_s12, 1  ;;  %v516_v2 = vmov 0   ;;  %v517_v3 = vmov 0.0  }
  0x15   : > { %184 = vst.msk [vmem:[#allocation2] sm:$0xff] %vm183_vm0, %v515_v0  ;;  %426 = vset.pattern.permute.xlu0 %v516_v2  ;;  %427 = vset.pattern.permute.xlu1 %v516_v2  ;;  %v189_v9 = vlaneseq  ;;  %v240_v28 = vstv %s363_s3  ;;  %s167_s12 = scalar_lea.vmem [#allocation5], %s360_s5 }
  0x16   : > { %s361_s24 = sshll.u32 %s169_s23, 3  ;;  %428 = vset.pattern.permute.xlu2 %v516_v2  ;;  %185 = vst.msk [vmem:[#allocation3] sm:$0xff] %vm183_vm0, %v517_v3  ;;  %s270_s15 = sshll.u32 %s167_s12, 4  ;;  %s271_s15 = int_to_ptr.vmem [resolvable:$true] %s270_s15 }
  0x17   : > { %s174_s27 = scalar_lea.vmem %s640_s0, %s361_s24  ;;  %s178_s30 = scalar_lea.vmem %s641_s1, %s361_s24  ;;  %186 = vst.msk [vmem:[#allocation4] sm:$0xff] %vm183_vm0, %v517_v3  ;;  %v190_v11 = vand.u32 127, %v189_v9  ;;  %v238_v27 = vshrl.u32 %v189_v9, 7 }
  0x18   : > { %v187_v1 = vld [vmem:[%s174_s27] sm:$0xff]  ;;  %s451_s23 = scalar_lea.hbm %s450_s20, 8 }
  0x19   : > { %205 = vmax.xlane.f32.xlu0 %v187_v1  ;;  %v188_v4 = vld [vmem:[%s178_s30] sm:$0xff]  ;;  %v241_v30 = vadd.s32 %v240_v28, %v238_v27  ;;  %p452_p12 = scmp.ne.s32.totalorder %s450_s20, %s451_s23  ;;  %p457_p2 = scmp.lt.s32.totalorder %s455_s26, %s451_s23 }
  0x1a   : > { %196 = vperm.xlu1 %427, %v188_v4  }
  0x1b   : > { %vm242_vm2 = vcmp.lt.s32.totalorder %v241_v30, 12  ;;  %p453_p13 = pnand %p452_p12, %p573_p4  ;;  %p458_p3 = por %p457_p2, %p456_p1 }
  0x1c   : > { %v207_v5 = vld [vmem:[#allocation2] sm:$0xff] }
  0x1d   : > { %v209_v22 = vld [vmem:[#allocation3] sm:$0xff]  ;;  %p454_p0 = pneg %p453_p13 }
  0x1e   : > { %v194_v17 = vld [vmem:[#allocation4] sm:$0xff] }
  0x1f   : > { %p459_p5 = pnand %p458_p3, %p454_p0 }
  0x8c   : > { %v206_v6 = vpop.xlane.xlu0 %205  ;;  %v197_v10 = vpop.permute.xlu1 %196 }
  0x8d   : > { %v208_v7 = vmax.f32 %v207_v5, %v206_v6  ;;  %vm198_vm1 = vcmp.eq.s32.totalorder %v190_v11, %v197_v10 }
  0x8e   : > { %v199_v12 = vsel %vm198_vm1, %v187_v1, 0.0 }
  0x8f   : > { %v210_v8 = vsub.f32 %v207_v5, %v208_v7  ;;  %226 = vst.msk [vmem:[#allocation2] sm:$0xff] %vm183_vm0, %v208_v7  ;;  %216 = vperm.xlu0 %426, %v208_v7   ;;  %200 = vadd.xlane.f32.xlu2 %v199_v12 }
  0x91   : > { %v211_v20 = vmul.f32 1.442695, %v210_v8 }
  0x96   : > { %v233_v32 = vld [vmem:[#allocation2] sm:$0xff] }
 0x101   : > { %v217_v13 = vpop.permute.xlu0 %216 }
 0x102   : > { %v219_v14 = vsub.f32 %v187_v1, %v217_v13  ;;  %v201_v18 = vpop.xlane.xlu2 %200 }
 0x103   : > { %v202_v19 = vadd.f32 %v201_v18, %v194_v17 }
 0x104   : > { %v220_v15 = vmul.f32 1.442695, %v219_v14 }
 0x105   : > { %204 = vst.msk [vmem:[#allocation4] sm:$0xff] %vm183_vm0, %v202_v19 }
 0x106   : > { %429 = vpow2.f32 %v220_v15 }
 0x107   : > { %431 = vpow2.f32 %v211_v20 }
 0x10c   : > { %v430_v16 = vpop.eup %429  ;;  %v235_v33 = vld [vmem:[#allocation4] sm:$0xff] }
 0x10d   : > { %222 = vadd.xlane.f32.xlu1 %v430_v16  ;;  %v432_v21 = vpop.eup %431 }
 0x10e   : > { %v213_v23 = vmul.f32 %v432_v21, %v209_v22 }
 0x180   : > { %v223_v24 = vpop.xlane.xlu1 %222 }
 0x181   : > { %v224_v25 = vadd.f32 %v223_v24, %v213_v23 }
 0x183   : > { %225 = vst.msk [vmem:[#allocation3] sm:$0xff] %vm183_vm0, %v224_v25 }
 0x18a   : > { %v230_v26 = vld [vmem:[#allocation3] sm:$0xff] }
 0x18b   : > { %433 = vlog2.f32 %v230_v26 }
 0x191   : > { %v434_v29 = vpop.eup %433 }
 0x192   : > { %v232_v31 = vmul.f32 0.6931472, %v434_v29 }
 0x194   : > { %v234_v34 = vadd.f32 %v233_v32, %v232_v31 }
 0x196   : > { %v236_v35 = vsub.f32 %v234_v34, %v235_v33 }
 0x198   : > { %v243_v36 = vsel %vm242_vm2, %v236_v35, 0.0 }
 0x199   : > { %v244_v37 = vsel %vm183_vm0, %v243_v36, 0.0 }
 0x19a   : > { %v245_v38 = vrot.slane %v244_v37, 4 }
 0x19c   : > { %v246_v39 = vadd.f32 %v245_v38, %v244_v37 }
 0x19e   : > { %v247_v40 = vrot.slane %v246_v39, 2 }
 0x1a0   : > { %v248_v41 = vadd.f32 %v247_v40, %v246_v39 }
 0x1a2   : > { %v249_v42 = vrot.slane %v248_v41, 1 }
 0x1a4   : > { %v250_v43 = vadd.f32 %v249_v42, %v248_v41 }
 0x1a6   : > { %253 = vperm.xlu2 %428, %v250_v43  }
 0x200   : > { %v254_v44 = vpop.permute.xlu2 %253 }
 0x201   : > { %256 = vst [vmem:[%s167_s12] sm:$0xff] %v254_v44 }
 0x202   : > { %462 = shalt.err (!%p459_p5)
}
 0x203   : > { %368 = dma.vmem_to_hbm [thread:$0]  (%p573_p4), %s271_s15, 128, %s273_s16, %s258_s18  }
 0x204 PF: > { %p374_p6 = scmp.ge.s32.totalorder %s513_s14, 2  ;;  %s284_s29 = sand.u32 1, %s493_s9  }
 0x205   : > { %s285_s30 = scalar_lea.sflag [#allocation6], %s284_s29 }
 0x206   : > { %p371_p7 = pnand %p374_p6, %p580_p8 }
 0x208   : > { %p372_p9 = pneg %p371_p7 }
 0x20a   : > { %488 = dma.done.wait (%p372_p9), %s285_s30, 128  }
 0x20b   : > { %490 = vsyncadd (%p372_p9), %s285_s30, 4294967168  ;;  %s15_s14 = sadd.s32 1, %s513_s14   ;;  %s645_s9 = smov %s497_s10 }
 0x20c   : > { %p12_p10 = scmp.ge.s32.totalorder %s15_s14, 4   ;;  %s646_s10 = smov %s501_s11 }
 0x20d   : > { %s647_s11 = smov %s586_s22  ;;  %s648_s12 = smov %s509_s13 }
 0x20e   : > { %s649_s13 = smov %s651_s17  ;;  %14 = sbr.rel (!%p12_p10) target bundleno = 4 (0x4), region = 74 }
 0x213   :  { %291 = vsyncpa [#allocation6], 1 }
 0x214   :  { %293 = vsyncpa [#allocation6 + $0x1], 1 }

</bundles_post_ra>
